<compile_context>
chip_gen: v6e
topology: v6e:2x2x1
jax: 0.10.0
libtpu: 0.0.40
codegen_flags: <defaults>
</compile_context>

<pallas_src>
import functools

import jax
import jax.numpy as jnp
from jax.experimental import pallas as pl
from jax.experimental.pallas import tpu as pltpu


def _round_up(x, m):
    return (x + m - 1) // m * m


# --------------------------------------------------------------------------------------
# One-time probes (cached) - no per-call host sync, no silent double-compilation.
# --------------------------------------------------------------------------------------
@functools.lru_cache(maxsize=1)
def _vmem_limit_bytes():
    """Generation-aware scoped-VMEM request: ~75% of physical, capped at 100 MiB."""
    cap = 64 * 1024 * 1024  # conservative default if the query fails (works everywhere)
    try:
        cap = int(pltpu.get_tpu_info().vmem_capacity_bytes)
    except Exception:
        pass
    # Leave ~25% headroom for double-buffered x/out tiles, internal scratch, semaphores.
    return int(min(cap * 3 // 4, 100 * 1024 * 1024))


@functools.lru_cache(maxsize=1)
def _single_buffer_weights_supported():
    """Probe once whether pipeline_mode=pl.Buffered(1) lowers on this JAX/libtpu."""
    try:
        def _probe_kernel(a_ref, o_ref):
            o_ref[...] = a_ref[...] + 1.0

        fn = pl.pallas_call(
            _probe_kernel,
            out_shape=jax.ShapeDtypeStruct((16, 128), jnp.float32),
            grid_spec=pltpu.PrefetchScalarGridSpec(
                num_scalar_prefetch=0,
                grid=(2,),
                in_specs=[pl.BlockSpec((8, 128), lambda i: (0, 0),
                                       pipeline_mode=pl.Buffered(1))],
                out_specs=pl.BlockSpec((8, 128), lambda i: (i, 0)),
            ),
        )
        jax.jit(fn).lower(jax.ShapeDtypeStruct((8, 128), jnp.float32)).compile()
        return True
    except Exception:
        # TODO(synk): if Buffered(1) is ever unsupported, the better fallback is weights in
        # memory_space=pl.ANY with a one-time manual DMA into VMEM scratch (pl.when id==0)
        # instead of double-buffering resident weights.
        return False


# --------------------------------------------------------------------------------------
# Kernel
# --------------------------------------------------------------------------------------
def _mlp_kernel(x_ref, w1_ref, b1_ref, w2_ref, b2_ref, w3_ref, b3_ref, o_ref):
    # x is pre-cast to the MXU operand dtype in the wrapper; accumulation is always f32.
    h1 = jnp.dot(x_ref[...], w1_ref[...], preferred_element_type=jnp.float32)
    h1 = jnp.maximum(h1 + b1_ref[...], 0.0)                       # bias + ReLU in f32
    h2 = jnp.dot(h1.astype(w2_ref.dtype), w2_ref[...], preferred_element_type=jnp.float32)
    h2 = jnp.maximum(h2 + b2_ref[...], 0.0)
    out = jnp.dot(h2.astype(w3_ref.dtype), w3_ref[...], preferred_element_type=jnp.float32)
    o_ref[...] = (out + b3_ref[...]).astype(o_ref.dtype)          # lane-dense writeback


# --------------------------------------------------------------------------------------
# Parameter preparation (pad/cast ONCE, cache with the params - not per forward call)
# --------------------------------------------------------------------------------------
def prepare_params(params, *, mxu_dtype=None):
    """Pad all dims to multiples of 128 and (optionally) cast weights to the MXU dtype.

    mxu_dtype=jnp.bfloat16 is recommended on v5e, v6e and v7x (bf16 is the native MXU
    rate on all of them); accumulation stays f32 inside the kernel.
    """
    w1, b1 = params["w1"], params["b1"].reshape(1, -1)
    w2, b2 = params["w2"], params["b2"].reshape(1, -1)
    w3, b3 = params["w3"], params["b3"].reshape(1, -1)

    d_in, h1d = w1.shape
    h2d = w2.shape[1]
    latent = w3.shape[1]
    d_in_p = _round_up(d_in, 128)
    h1_p = _round_up(h1d, 128)
    h2_p = _round_up(h2d, 128)
    latent_p = _round_up(latent, 128)

    # Zero padding keeps the math exact (padded activations are ReLU(0+0)=0 and padded
    # weight rows/cols are zero); padded latent columns are sliced off in the wrapper.
    w1 = jnp.pad(w1, ((0, d_in_p - d_in), (0, h1_p - h1d)))
    b1 = jnp.pad(b1, ((0, 0), (0, h1_p - h1d)))
    w2 = jnp.pad(w2, ((0, h1_p - h1d), (0, h2_p - h2d)))
    b2 = jnp.pad(b2, ((0, 0), (0, h2_p - h2d)))
    w3 = jnp.pad(w3, ((0, h2_p - h2d), (0, latent_p - latent)))
    b3 = jnp.pad(b3, ((0, 0), (0, latent_p - latent)))

    if mxu_dtype is not None:
        w1 = w1.astype(mxu_dtype)
        w2 = w2.astype(mxu_dtype)
        w3 = w3.astype(mxu_dtype)
    b1 = b1.astype(jnp.float32)
    b2 = b2.astype(jnp.float32)
    b3 = b3.astype(jnp.float32)

    return {
        "_prepared": True,
        "w1": w1, "b1": b1, "w2": w2, "b2": b2, "w3": w3, "b3": b3,
        "d_in": d_in, "d_in_p": d_in_p,
        "h1_p": h1_p, "h2_p": h2_p,
        "latent": latent, "latent_p": latent_p,
        "mxu_dtype": mxu_dtype,
    }


# --------------------------------------------------------------------------------------
# Forward
# --------------------------------------------------------------------------------------
def mlp_encoder_forward(x, params, *, tile_b=None, mxu_dtype=None):
    """Fused MLP encoder forward pass.

    x:       (B, input_dim)
    params:  raw {"w1","b1","w2","b2","w3","b3"} or the output of prepare_params()
             (prepare once and reuse to avoid per-call weight padding/casting).
    tile_b:  batch tile (multiple of 8). Default 512 (sweep 256-1024 on v6e/v7x),
             clamped so the batch grid has >=2 steps (v7x megacore).
    returns: (B, latent_dim) in x's original dtype.
    """
    if not params.get("_prepared", False):
        params = prepare_params(params, mxu_dtype=mxu_dtype)

    w1, b1 = params["w1"], params["b1"]
    w2, b2 = params["w2"], params["b2"]
    w3, b3 = params["w3"], params["b3"]
    d_in, d_in_p = params["d_in"], params["d_in_p"]
    h1_p, h2_p = params["h1_p"], params["h2_p"]
    latent, latent_p = params["latent"], params["latent_p"]

    B = x.shape[0]
    assert x.shape[1] == d_in, f"expected input_dim={d_in}, got {x.shape[1]}"
    out_dtype = x.dtype

    # Cast x once in the wrapper (halves the per-step x DMA for bf16; no per-tile VPU cast).
    if params["mxu_dtype"] is not None:
        x = x.astype(params["mxu_dtype"])

    # Batch tiling: default 512, clamped so the grid has >=2 steps (both v7x TCs get work).
    if tile_b is None:
        tile_b = min(512, max(8, _round_up(pl.cdiv(B, 2), 8)))
    tile_b = max(8, _round_up(tile_b, 8))
    B_p = _round_up(B, tile_b)

    pad_rows, pad_cols = B_p - B, d_in_p - d_in
    if pad_rows or pad_cols:
        x = jnp.pad(x, ((0, pad_rows), (0, pad_cols)))
    grid = (B_p // tile_b,)

    # Advisory cost estimate so XLA schedules around the fused call.
    flops = 2 * B_p * (d_in_p * h1_p + h1_p * h2_p + h2_p * latent_p)
    bytes_accessed = int(
        x.size * x.dtype.itemsize
        + sum(a.size * a.dtype.itemsize for a in (w1, b1, w2, b2, w3, b3))
        + B_p * latent_p * jnp.dtype(out_dtype).itemsize
    )
    cost = pl.CostEstimate(flops=flops, transcendentals=0, bytes_accessed=bytes_accessed)

    single = _single_buffer_weights_supported()

    def wspec(shape):
        # Constant block index across the grid -> weights stay resident; single-buffer to
        # reclaim the pure-overhead second buffer when supported.
        if single:
            return pl.BlockSpec(shape, lambda i: (0, 0), pipeline_mode=pl.Buffered(1))
        return pl.BlockSpec(shape, lambda i: (0, 0))

    fwd = pl.pallas_call(
        _mlp_kernel,
        out_shape=jax.ShapeDtypeStruct((B_p, latent_p), out_dtype),
        grid_spec=pltpu.PrefetchScalarGridSpec(
            num_scalar_prefetch=0,
            grid=grid,
            in_specs=[
                pl.BlockSpec((tile_b, d_in_p), lambda i: (i, 0)),  # x tile (pipelined)
                wspec((d_in_p, h1_p)),                             # w1 (resident)
                wspec((1, h1_p)),                                  # b1
                wspec((h1_p, h2_p)),                               # w2
                wspec((1, h2_p)),                                  # b2
                wspec((h2_p, latent_p)),                           # w3
                wspec((1, latent_p)),                              # b3
            ],
            out_specs=pl.BlockSpec((tile_b, latent_p), lambda i: (i, 0)),
        ),
        compiler_params=pltpu.CompilerParams(
            dimension_semantics=("parallel",),
            vmem_limit_bytes=_vmem_limit_bytes(),
        ),
        cost_estimate=cost,
    )

    out = fwd(x, w1, b1, w2, b2, w3, b3)
    return out[:B, :latent]


# --------------------------------------------------------------------------------------
# Synthetic init (PyTorch-like uniform scaling) + self-test
# --------------------------------------------------------------------------------------
def init_params(key, input_dim, latent_dim, layer1_dim, layer2_dim, dtype=jnp.float32):
    ks = jax.random.split(key, 6)

    def lin(kw, kb, fan_in, fan_out):
        bound = 1.0 / jnp.sqrt(fan_in)
        w = jax.random.uniform(kw, (fan_in, fan_out), dtype, -bound, bound)
        b = jax.random.uniform(kb, (1, fan_out), dtype, -bound, bound)
        return w, b

    w1, b1 = lin(ks[0], ks[1], input_dim, layer1_dim)
    w2, b2 = lin(ks[2], ks[3], layer1_dim, layer2_dim)
    w3, b3 = lin(ks[4], ks[5], layer2_dim, latent_dim)
    return {"w1": w1, "b1": b1, "w2": w2, "b2": b2, "w3": w3, "b3": b3}


if __name__ == "__main__":
    # Small shapes consistent with the module's forward: x is (batch, input_dim).
    batch, input_dim, latent_dim = 64, 32, 16
    layer1_dim, layer2_dim = 256, 256  # module defaults are 1024; small for the test

    key = jax.random.PRNGKey(0)
    kx, kp = jax.random.split(key)
    x = jax.random.normal(kx, (batch, input_dim), dtype=jnp.float32)
    raw = init_params(kp, input_dim, latent_dim, layer1_dim, layer2_dim)

    # Reference in plain JAX (same math as nn.Sequential of Linear/ReLU).
    h = jnp.maximum(x @ raw["w1"] + raw["b1"], 0.0)
    h = jnp.maximum(h @ raw["w2"] + raw["b2"], 0.0)
    ref = h @ raw["w3"] + raw["b3"]

    # f32 path: params prepared (padded) once, multi-step batch grid, lane-dense output.
    prepared = prepare_params(raw)
    out = jax.block_until_ready(mlp_encoder_forward(x, prepared, tile_b=16))
    assert out.shape == (batch, latent_dim)
    assert jnp.allclose(out, ref, atol=1e-5, rtol=1e-5)

    # bf16-on-MXU path (recommended on v5e/v6e/v7x): f32 accumulation, looser tolerance.
    prepared_bf16 = prepare_params(raw, mxu_dtype=jnp.bfloat16)
    out_bf16 = jax.block_until_ready(mlp_encoder_forward(x, prepared_bf16, tile_b=16))
    assert out_bf16.shape == (batch, latent_dim)
    assert jnp.allclose(out_bf16, ref, atol=5e-2, rtol=5e-2)

    # Default tile selection (auto tile_b, >=2 grid steps) with raw params path.
    out_def = jax.block_until_ready(mlp_encoder_forward(x, raw))
    assert out_def.shape == (batch, latent_dim)
    assert jnp.allclose(out_def, ref, atol=1e-5, rtol=1e-5)

    print("KERNEL_OK")
</pallas_src>

<mosaic_0001>
module attributes {stable_mosaic.version = 11 : i64} {
  func.func @_mlp_kernel(%arg0: i32, %arg1: memref<16x128xf32, #tpu.memory_space<vmem>>, %arg2: memref<128x256xf32, #tpu.memory_space<vmem>>, %arg3: memref<1x256xf32, #tpu.memory_space<vmem>>, %arg4: memref<256x256xf32, #tpu.memory_space<vmem>>, %arg5: memref<1x256xf32, #tpu.memory_space<vmem>>, %arg6: memref<256x128xf32, #tpu.memory_space<vmem>>, %arg7: memref<1x128xf32, #tpu.memory_space<vmem>>, %arg8: memref<16x128xf32, #tpu.memory_space<vmem>>) attributes {dimension_semantics = [#tpu.dimension_semantics<parallel>], iteration_bounds = array<i64: 4>, scalar_prefetch = 0 : i64, scratch_operands = 0 : i64, tpu.core_type = #tpu.core_type<tc>, window_params = [{transform_indices = @transform_0, window_bounds = array<i64: 16, 128>}, {pipeline_mode = #tpu.pipeline_mode<synchronous>, transform_indices = @transform_1, window_bounds = array<i64: 128, 256>}, {pipeline_mode = #tpu.pipeline_mode<synchronous>, transform_indices = @transform_2, window_bounds = array<i64: 1, 256>}, {pipeline_mode = #tpu.pipeline_mode<synchronous>, transform_indices = @transform_3, window_bounds = array<i64: 256, 256>}, {pipeline_mode = #tpu.pipeline_mode<synchronous>, transform_indices = @transform_4, window_bounds = array<i64: 1, 256>}, {pipeline_mode = #tpu.pipeline_mode<synchronous>, transform_indices = @transform_5, window_bounds = array<i64: 256, 128>}, {pipeline_mode = #tpu.pipeline_mode<synchronous>, transform_indices = @transform_6, window_bounds = array<i64: 1, 128>}, {transform_indices = @transform_7, window_bounds = array<i64: 16, 128>}]} {
    %c0 = arith.constant 0 : index
    %c0_0 = arith.constant 0 : index
    %0 = vector.load %arg1[%c0, %c0_0] : memref<16x128xf32, #tpu.memory_space<vmem>>, vector<16x128xf32>
    %c0_1 = arith.constant 0 : index
    %c0_2 = arith.constant 0 : index
    %1 = vector.load %arg2[%c0_1, %c0_2] : memref<128x256xf32, #tpu.memory_space<vmem>>, vector<128x256xf32>
    %cst = arith.constant dense<0.000000e+00> : vector<16x256xf32>
    %2 = tpu.matmul %0, %1, %cst {dimension_numbers = #tpu.dot_dimension_numbers<[1], [0], [0], [1], [0, 0, 1, 1], [], []>} : vector<16x128xf32>, vector<128x256xf32>, vector<16x256xf32> -> vector<16x256xf32>
    %c0_3 = arith.constant 0 : index
    %c0_4 = arith.constant 0 : index
    %3 = vector.load %arg3[%c0_3, %c0_4] : memref<1x256xf32, #tpu.memory_space<vmem>>, vector<1x256xf32>
    %4 = vector.broadcast %3 : vector<1x256xf32> to vector<16x256xf32>
    %5 = arith.addf %2, %4 : vector<16x256xf32>
    %cst_5 = arith.constant 0.000000e+00 : f32
    %6 = vector.broadcast %cst_5 : f32 to vector<16x256xf32>
    %7 = arith.maximumf %5, %6 : vector<16x256xf32>
    %c0_6 = arith.constant 0 : index
    %c0_7 = arith.constant 0 : index
    %8 = vector.load %arg4[%c0_6, %c0_7] : memref<256x256xf32, #tpu.memory_space<vmem>>, vector<256x256xf32>
    %cst_8 = arith.constant dense<0.000000e+00> : vector<16x256xf32>
    %9 = tpu.matmul %7, %8, %cst_8 {dimension_numbers = #tpu.dot_dimension_numbers<[1], [0], [0], [1], [0, 0, 1, 1], [], []>} : vector<16x256xf32>, vector<256x256xf32>, vector<16x256xf32> -> vector<16x256xf32>
    %c0_9 = arith.constant 0 : index
    %c0_10 = arith.constant 0 : index
    %10 = vector.load %arg5[%c0_9, %c0_10] : memref<1x256xf32, #tpu.memory_space<vmem>>, vector<1x256xf32>
    %11 = vector.broadcast %10 : vector<1x256xf32> to vector<16x256xf32>
    %12 = arith.addf %9, %11 : vector<16x256xf32>
    %cst_11 = arith.constant 0.000000e+00 : f32
    %13 = vector.broadcast %cst_11 : f32 to vector<16x256xf32>
    %14 = arith.maximumf %12, %13 : vector<16x256xf32>
    %c0_12 = arith.constant 0 : index
    %c0_13 = arith.constant 0 : index
    %15 = vector.load %arg6[%c0_12, %c0_13] : memref<256x128xf32, #tpu.memory_space<vmem>>, vector<256x128xf32>
    %cst_14 = arith.constant dense<0.000000e+00> : vector<16x128xf32>
    %16 = tpu.matmul %14, %15, %cst_14 {dimension_numbers = #tpu.dot_dimension_numbers<[1], [0], [0], [1], [0, 0, 1, 1], [], []>} : vector<16x256xf32>, vector<256x128xf32>, vector<16x128xf32> -> vector<16x128xf32>
    %c0_15 = arith.constant 0 : index
    %c0_16 = arith.constant 0 : index
    %17 = vector.load %arg7[%c0_15, %c0_16] : memref<1x128xf32, #tpu.memory_space<vmem>>, vector<1x128xf32>
    %18 = vector.broadcast %17 : vector<1x128xf32> to vector<16x128xf32>
    %19 = arith.addf %16, %18 : vector<16x128xf32>
    %c0_17 = arith.constant 0 : index
    %c0_18 = arith.constant 0 : index
    %20 = vector.load %arg8[%c0_17, %c0_18] : memref<16x128xf32, #tpu.memory_space<vmem>>, vector<16x128xf32>
    tpu.vector_store %arg8[%c0_17, %c0_18], %19 {strides = array<i32>} : memref<16x128xf32, #tpu.memory_space<vmem>>, vector<16x128xf32>,
    return
  }
  func.func @transform_0(%arg0: i32) -> (i32, i32) {
    %c0_i32 = arith.constant 0 : i32
    %c0_i32_0 = arith.constant 0 : i32
    return %arg0, %c0_i32 : i32, i32
  }
  func.func @transform_1(%arg0: i32) -> (i32, i32) {
    %c0_i32 = arith.constant 0 : i32
    %c0_i32_0 = arith.constant 0 : i32
    %c0_i32_1 = arith.constant 0 : i32
    return %c0_i32, %c0_i32_0 : i32, i32
  }
  func.func @transform_2(%arg0: i32) -> (i32, i32) {
    %c0_i32 = arith.constant 0 : i32
    %c0_i32_0 = arith.constant 0 : i32
    %c0_i32_1 = arith.constant 0 : i32
    return %c0_i32, %c0_i32_0 : i32, i32
  }
  func.func @transform_3(%arg0: i32) -> (i32, i32) {
    %c0_i32 = arith.constant 0 : i32
    %c0_i32_0 = arith.constant 0 : i32
    %c0_i32_1 = arith.constant 0 : i32
    return %c0_i32, %c0_i32_0 : i32, i32
  }
  func.func @transform_4(%arg0: i32) -> (i32, i32) {
    %c0_i32 = arith.constant 0 : i32
    %c0_i32_0 = arith.constant 0 : i32
    %c0_i32_1 = arith.constant 0 : i32
    return %c0_i32, %c0_i32_0 : i32, i32
  }
  func.func @transform_5(%arg0: i32) -> (i32, i32) {
    %c0_i32 = arith.constant 0 : i32
    %c0_i32_0 = arith.constant 0 : i32
    %c0_i32_1 = arith.constant 0 : i32
    return %c0_i32, %c0_i32_0 : i32, i32
  }
  func.func @transform_6(%arg0: i32) -> (i32, i32) {
    %c0_i32 = arith.constant 0 : i32
    %c0_i32_0 = arith.constant 0 : i32
    %c0_i32_1 = arith.constant 0 : i32
    return %c0_i32, %c0_i32_0 : i32, i32
  }
  func.func @transform_7(%arg0: i32) -> (i32, i32) {
    %c0_i32 = arith.constant 0 : i32
    %c0_i32_0 = arith.constant 0 : i32
    return %arg0, %c0_i32 : i32, i32
  }
}

</mosaic_0001>

<bundles_post_ra>
// kernel: tpu_custom_call.1
= control target key start
LH: loop header
LB: loop body
LE: loop exit
PB: predicated region body
PF: predicated region fallthrough
CT: control target
= control target key end

     0   :  { %s1459_s0 = inlined_call_operand.hbm [shape: f32[64,128], index: 0, kind: input, shape index: {}]   ;;  %s1460_s1 = inlined_call_operand.hbm [shape: f32[128,256], index: 1, kind: input, shape index: {}]   ;;  %s1461_s2 = inlined_call_operand.vmem [shape: f32[1,256], index: 2, kind: input, shape index: {}]   ;;  %s1462_s3 = inlined_call_operand.hbm [shape: f32[256,256], index: 3, kind: input, shape index: {}]   ;;  %s1463_s4 = inlined_call_operand.vmem [shape: f32[1,256], index: 4, kind: input, shape index: {}]   ;;  %s1464_s5 = inlined_call_operand.hbm [shape: f32[256,128], index: 5, kind: input, shape index: {}]   ;;  %s1465_s6 = inlined_call_operand.vmem [shape: f32[1,128], index: 6, kind: input, shape index: {}]   ;;  %s1466_s7 = inlined_call_operand.hbm [shape: f32[64,128], index: 7, kind: output, shape index: {}]  }
   0x1   :  { %1473 = sst [smem:[#allocation15_spill]] %s1460_s1 }
   0x2   :  { %12 = vsyncpa [#allocation3], 0 }
   0x3   :  { %14 = vsyncpa [#allocation3 + $0x1], 0 }
   0x4   :  { %15 = vsyncpa [#allocation6], 0 }
   0x5   :  { %16 = vsyncpa [#allocation9], 0 }
   0x6   :  { %17 = vsyncpa [#allocation4], 0 }
   0x7   :  { %19 = vsyncpa [#allocation4 + $0x1], 0  ;;  %s1236_s24 = smov 0   ;;  %s1238_s25 = smov 0  }
   0x8   :  { %s1240_s26 = smov 0   ;;  %s1242_s27 = smov 0  }
   0x9 LB: > { %s1257_s28 = sadd.s32 4294967295, %s1182_s27   ;;  %s859_s29 = sadd.s32 4294967294, %s1182_s27   ;;  %s1182_s27 = sphi %s1242_s27, %s1495_s27   ;;  %s1178_s26 = sphi %s1240_s26, %s1494_s26   ;;  %s1174_s25 = sphi %s1238_s25, %s1493_s25   ;;  %s1170_s24 = sphi %s1236_s24, %s1492_s24  }
   0xa   : > { %p45_p0 = scmp.ne.s32.totalorder %s1174_s25, %s1170_s24  ;;  %p1467_p1 = scmp.eq.s32.totalorder %s1257_s28, 0 }
   0xb   : > { %p201_p3 = scmp.eq.s32.totalorder %s859_s29, 3  ;;  %p860_p5 = scmp.ge.s32.totalorder %s1182_s27, 1 }
   0xc   : > { %p1266_p4 = por %p1467_p1, %p45_p0  ;;  %p208_p7 = scmp.lt.s32.totalorder %s1182_s27, 5 }
   0xd   : > { %p1271_p6 = por %p201_p3, %p45_p0  ;;  %s1184_s10 = smov [#allocation5]  }
   0xe   : > { %s1474_s30 = scalar_select %p1266_p4, 1, 0 }
   0xf   : > { %s1475_s8 = scalar_select %p1271_p6, 1, 0 }
  0x10   : > { %p1276_p8 = pnand %p860_p5, %p208_p7  ;;  %s220_s11 = sshll.u32 %s1184_s10, 4  ;;  %s221_s11 = int_to_ptr.vmem [resolvable:$true] %s220_s11 }
  0x11   : > { %s1185_s13 = smov [#allocation7]   ;;  %s1186_s15 = smov [#allocation8]  }
  0x12   : > { %s1476_s9 = scalar_select %p1276_p8, 1, 0 }
  0x13   : > { %p936_p9 = pneg %p1276_p8  ;;  %s236_s14 = sshll.u32 %s1185_s13, 4  ;;  %s237_s14 = int_to_ptr.vmem [resolvable:$true] %s236_s14 }
  0x14   : > { %s252_s16 = sshll.u32 %s1186_s15, 4  ;;  %s1015_s17 = scalar_lea.vmem %s221_s11, 4096  ;;  %s253_s16 = int_to_ptr.vmem [resolvable:$true] %s252_s16 }
  0x15   : > { %p1284_p10 = pnand %p936_p9, %p1467_p1  ;;  %p1016_p12 = scmp.ne.s32.totalorder %s221_s11, %s1015_s17 }
  0x16   : > { %p1023_p3 = scmp.lt.s32.totalorder %s221_s11, %s221_s11  ;;  %p1024_p5 = scmp.lt.s32.totalorder %s1015_s17, %s1015_s17 }
  0x17   : > { %p1006_p11 = pneg %p1284_p10 }
  0x18   : > { %p1025_p7 = por %p1024_p5, %p1023_p3 }
  0x19   : > { %p1018_p13 = pnand %p1016_p12, %p1006_p11 }
  0x1b   : > { %p1019_p0 = pneg %p1018_p13 }
  0x1d   : > { %p1026_p9 = pnand %p1025_p7, %p1019_p0 }
  0x1f   : > { %1029 = shalt.err (!%p1026_p9)
}
  0x20   : > { %s1187_s18 = smov 256   ;;  %s1188_s19 = smov 16  }
  0x21   : > { %s1478_s1 = sld [smem:[#allocation15_spill]]  ;;  %s1041_s22 = scalar_lea.vmem %s237_s14, 8192 }
  0x22   : > { %p1042_p1 = scmp.ne.s32.totalorder %s237_s14, %s1041_s22  ;;  %p1049_p2 = scmp.lt.s32.totalorder %s237_s14, %s237_s14 }
  0x23   : > { %p1050_p6 = scmp.lt.s32.totalorder %s1041_s22, %s1041_s22 }
  0x24   : > { %p1044_p12 = pnand %p1042_p1, %p1006_p11 }
  0x25   : > { %p1051_p3 = por %p1050_p6, %p1049_p2 }
  0x26   : > { %p1045_p13 = pneg %p1044_p12 }
  0x27   : > { %939 = dma.hbm_to_vmem [thread:$0]  (!%p1284_p10), %s1478_s1, 4096, %s221_s11, [#allocation6], %s1187_s18, %s1187_s18, %s1188_s19  }
  0x28   : > { %p1052_p0 = pnand %p1051_p3, %p1045_p13 }
  0x2a   : > { %1055 = shalt.err (!%p1052_p0)
}
  0x2b   : > { %942 = dma.hbm_to_vmem [thread:$0]  (!%p1284_p10), %s1462_s3, 8192, %s237_s14, [#allocation6], %s1187_s18, %s1187_s18, %s1188_s19  }
  0x2c   : > { %s1067_s10 = scalar_lea.vmem %s253_s16, 4096  ;;  %p1075_p9 = scmp.lt.s32.totalorder %s253_s16, %s253_s16 }
  0x2d   : > { %p1068_p5 = scmp.ne.s32.totalorder %s253_s16, %s1067_s10  ;;  %p1076_p12 = scmp.lt.s32.totalorder %s1067_s10, %s1067_s10 }
  0x2f   : > { %p1070_p7 = pnand %p1068_p5, %p1006_p11  ;;  %p1077_p4 = por %p1076_p12, %p1075_p9 }
  0x31   : > { %p1071_p1 = pneg %p1070_p7 }
  0x33   : > { %p1078_p2 = pnand %p1077_p4, %p1071_p1 }
  0x35   : > { %1081 = shalt.err (!%p1078_p2)
}
  0x36   : > { %s1469_s11 = smov 128   ;;  %s1470_s13 = smov 8  }
  0x37   : > { %945 = dma.hbm_to_vmem [thread:$0]  (!%p1284_p10), %s1464_s5, 4096, %s253_s16, [#allocation9], %s1469_s11, %s1469_s11, %s1470_s13  }
  0x38   : > { %s1318_s17 = sadd.s32 1, %s1182_s27   ;;  %s32_s19 = sadd.s32 1, %s1178_s26 }
  0x39   : > { %s29_s18 = ssub.s32 %s1182_s27, %s1318_s17  ;;  %p39_p6 = scmp.ne.s32.totalorder %s1178_s26, %s1174_s25 }
  0x3a   : > { %p30_p4 = scmp.eq.s32.totalorder %s29_s18, 0  ;;  %p40_p11 = scmp.eq.s32.totalorder %s1182_s27, 0 }
  0x3b   : > { %p957_p13 = scmp.lt.s32.totalorder %s1182_s27, 4  ;;  %p1479_p0 = scmp.eq.s32.totalorder %s1257_s28, 3 }
  0x3c   : > { %s1328_s20 = scalar_select %p30_p4, %s1178_s26, %s32_s19  }
  0x3d   : > { %p41_p3 = por %p40_p11, %p39_p6  ;;  %p1332_p5 = por %p1479_p0, %p39_p6 }
  0x3e   : > { %s269_s21 = sand.u32 1, %s1178_s26   ;;  %s880_s22 = sshll.u32 %s1182_s27, 8 }
  0x3f   : > { %s1480_s12 = scalar_select %p1332_p5, 1, 0 }
  0x40   : > { %s865_s16 = sshll.u32 %s269_s21, 4  ;;  %s1341_s10 = scalar_lea.hbm %s1459_s0, %s880_s22 }
  0x41   : > { %s273_s14 = scalar_lea.vmem [#allocation2], %s865_s16  ;;  %p1343_p10 = pnand %p957_p13, %p41_p3 }
  0x42   : > { %s280_s15 = sshll.u32 %s273_s14, 4  ;;  %s1349_s19 = scalar_lea.sflag [#allocation3], %s269_s21  ;;  %s1347_s15 = int_to_ptr.vmem [resolvable:$true] %s280_s15 }
  0x43   : > { %s1082_s11 = scalar_lea.hbm %s1341_s10, 256  ;;  %p1084_p1 = pneg %p1343_p10 }
  0x44   : > { %p1083_p7 = scmp.ne.s32.totalorder %s1341_s10, %s1082_s11  ;;  %s1087_s16 = scalar_lea.hbm %s1459_s0, 1024 }
  0x45   : > { %p1088_p2 = scmp.lt.s32.totalorder %s1341_s10, %s1459_s0  ;;  %p1089_p4 = scmp.lt.s32.totalorder %s1087_s16, %s1082_s11 }
  0x46   : > { %p1085_p9 = pnand %p1084_p1, %p1083_p7 }
  0x47   : > { %p1090_p6 = por %p1089_p4, %p1088_p2 }
  0x48   : > { %p1086_p12 = pneg %p1085_p9 }
  0x4a   : > { %p1091_p11 = pnand %p1090_p6, %p1086_p12 }
  0x4c   : > { %1094 = shalt.err (!%p1091_p11)
}
  0x4d   : > { %s1095_s21 = scalar_lea.vmem %s1347_s15, 256  ;;  %s1191_s13 = smov [#allocation2]  }
  0x4e   : > { %p1096_p13 = scmp.ne.s32.totalorder %s1347_s15, %s1095_s21  ;;  %s1100_s1 = sshll.u32 %s1191_s13, 4  ;;  %s1101_s1 = int_to_ptr.vmem [resolvable:$false] %s1100_s1 }
  0x4f   : > { %s1102_s22 = scalar_lea.vmem %s1101_s1, 512  ;;  %p1103_p7 = scmp.lt.s32.totalorder %s1347_s15, %s1101_s1 }
  0x50   : > { %p1098_p3 = pnand %p1096_p13, %p1084_p1  ;;  %p1104_p9 = scmp.lt.s32.totalorder %s1102_s22, %s1095_s21 }
  0x52   : > { %p1099_p0 = pneg %p1098_p3  ;;  %p1105_p5 = por %p1104_p9, %p1103_p7 }
  0x54   : > { %p1106_p8 = pnand %p1105_p5, %p1099_p0 }
  0x56   : > { %1109 = shalt.err (!%p1106_p8)
}
  0x57   : > { %s1482_s11 = smov 8   ;;  %s1483_s23 = smov 128  }
  0x58   : > { %949 = dma.hbm_to_vmem [thread:$0]  (!%p1343_p10), %s1341_s10, 256, %s1347_s15, %s1349_s19, %s1483_s23, %s1483_s23, %s1482_s11  }
  0x59   : > { %p1484_p1 = scmp.ne.s32.totalorder %s1476_s9, 0 }
  0x5a   : > { %s1376_s13 = sand.u32 (!%p1484_p1), 1, %s1174_s25   ;;  %p1485_p8 = scmp.ne.s32.totalorder (!%p1484_p1), %s1474_s30, 0 }
  0x5b   : > { %292 = sbr.rel (%p1484_p1) target bundleno = 753 (0x2f1), region = 48  ;;  %s869_s1 = sshll.u32 (!%p1484_p1), %s1376_s13, 4 }
  0x5c   : > { %s295_s16 = scalar_lea.sflag (!%p1484_p1), [#allocation3], %s1376_s13  ;;  %s1382_s18 = scalar_lea.vmem (!%p1484_p1), [#allocation2], %s869_s1 }
  0x60   : > { %1153 = dma.done.wait (%p1485_p8), %s295_s16, 256  }
  0x61   : > { %1155 = vsyncadd (%p1485_p8), %s295_s16, 4294967040  ;;  %p1486_p5 = scmp.eq.s32.totalorder %s1257_s28, 0 }
  0x63   : > { %1157 = dma.done.wait (%p1486_p5), [#allocation6], 12288   ;;  %p1487_p10 = pmov %p1486_p5 }
  0x64   : > { %p1488_p12 = pmov %p1486_p5 }
  0x65   : > { %1159 = vsyncadd (%p1487_p10), [#allocation6], 4294955008 }
  0x66   : > { %1161 = dma.done.wait (%p1488_p12), [#allocation9], 4096   ;;  %p1489_p2 = pmov %p1486_p5 }
  0x67   : > { %v1192_v0 = vmov 0.0   ;;  %v376_v1 = vld [vmem:[#allocation5 + $0xf8] sm:$0xff]  ;;  %v375_v2 = vld [vmem:[#allocation5 + $0xf0] sm:$0xff]  ;;  %v374_v3 = vld [vmem:[#allocation5 + $0xe8] sm:$0xff]  ;;  %s340_s14 = scalar_lea.vmem [#allocation10], %s869_s1  ;;  %s881_s22 = sshll.u32 %s1257_s28, 8 }
  0x68   : > { %1163 = vsyncadd (%p1489_p2), [#allocation9], 4294963200  ;;  %453 = vmatprep.mubr.f32.mxu0 %v1192_v0  ;;  %389 = vmatprep.subr.mxu0 %v376_v1  ;;  %v373_v4 = vld [vmem:[#allocation5 + $0xe0] sm:$0xff]  ;;  %v372_v5 = vld [vmem:[#allocation5 + $0xd8] sm:$0xff]  ;;  %s757_s21 = sshll.u32 %s340_s14, 4  ;;  %s1417_s16 = scalar_lea.hbm %s1466_s7, %s881_s22  ;;  %s1412_s21 = int_to_ptr.vmem [resolvable:$true] %s757_s21 }
  0x69   : > { %390 = vmatpush1.msra.mxu0 %v375_v2  ;;  %v371_v6 = vld [vmem:[#allocation5 + $0xd0] sm:$0xff]  ;;  %v370_v7 = vld [vmem:[#allocation5 + $0xc8] sm:$0xff]  ;;  %v369_v8 = vld [vmem:[#allocation5 + $0xc0] sm:$0xff]  ;;  %s744_s1 = scalar_lea.sflag [#allocation4], %s1376_s13  ;;  %p1490_p6 = scmp.ne.s32.totalorder %s1480_s12, 0 }
  0x6a   : > { %391 = vmatprep.subr.mxu0 %v374_v3  ;;  %v368_v9 = vld [vmem:[#allocation5 + $0xb8] sm:$0xff]  ;;  %v367_v10 = vld [vmem:[#allocation5 + $0xb0] sm:$0xff]  ;;  %v366_v11 = vld [vmem:[#allocation5 + $0xa8] sm:$0xff]  ;;  %s1193_s28 = smov [#allocation10]  }
  0x6b   : > { %392 = vmatpush1.msra.mxu0 %v373_v4  ;;  %v365_v12 = vld [vmem:[#allocation5 + $0xa0] sm:$0xff]  ;;  %v364_v13 = vld [vmem:[#allocation5 + $0x98] sm:$0xff]  ;;  %v363_v14 = vld [vmem:[#allocation5 + $0x90] sm:$0xff]  ;;  %s1114_s30 = sshll.u32 %s1193_s28, 4  ;;  %s1115_s30 = int_to_ptr.vmem [resolvable:$false] %s1114_s30 }
  0x6c   : > { %393 = vmatprep.subr.mxu0 %v372_v5  ;;  %v501_v15 = vld [vmem:[#allocation7 + $0xf8] sm:$0xff]  ;;  %v500_v16 = vld [vmem:[#allocation7 + $0xf0] sm:$0xff]  ;;  %v362_v17 = vld [vmem:[#allocation5 + $0x88] sm:$0xff]  ;;  %s1116_s9 = scalar_lea.vmem %s1115_s30, 512  ;;  %p1117_p3 = scmp.lt.s32.totalorder %s1412_s21, %s1115_s30 }
  0x6d   : > { %394 = vmatpush1.msra.mxu0 %v371_v6  ;;  %546 = vmatprep.subr.mxu1 %v501_v15  ;;  %v499_v18 = vld [vmem:[#allocation7 + $0xe8] sm:$0xff]  ;;  %v498_v19 = vld [vmem:[#allocation7 + $0xe0] sm:$0xff]  ;;  %v497_v21 = vld [vmem:[#allocation7 + $0xd8] sm:$0xff] }
  0x6e   : > { %395 = vmatprep.subr.mxu0 %v370_v7  ;;  %v361_v20 = vld [vmem:[#allocation5 + $0x80] sm:$0xff]  ;;  %547 = vmatpush1.msra.mxu1 %v500_v16  ;;  %v360_v22 = vld [vmem:[#allocation5 + $0x78] sm:$0xff]  ;;  %v496_v23 = vld [vmem:[#allocation7 + $0xd0] sm:$0xff] }
  0x6f   : > { %396 = vmatpush1.msra.mxu0 %v369_v8  ;;  %548 = vmatprep.subr.mxu1 %v499_v18  ;;  %v359_v24 = vld [vmem:[#allocation5 + $0x70] sm:$0xff]  ;;  %v495_v25 = vld [vmem:[#allocation7 + $0xc8] sm:$0xff]  ;;  %v494_v27 = vld [vmem:[#allocation7 + $0xc0] sm:$0xff] }
  0x70   : > { %397 = vmatprep.subr.mxu0 %v368_v9  ;;  %549 = vmatpush1.msra.mxu1 %v498_v19  ;;  %v358_v26 = vld [vmem:[#allocation5 + $0x68] sm:$0xff]  ;;  %v357_v28 = vld [vmem:[#allocation5 + $0x60] sm:$0xff]  ;;  %v493_v29 = vld [vmem:[#allocation7 + $0xb8] sm:$0xff] }
  0x71   : > { %398 = vmatpush1.msra.mxu0 %v367_v10  ;;  %550 = vmatprep.subr.mxu1 %v497_v21  ;;  %v356_v30 = vld [vmem:[#allocation5 + $0x58] sm:$0xff]  ;;  %v492_v31 = vld [vmem:[#allocation7 + $0xb0] sm:$0xff]  ;;  %v491_v33 = vld [vmem:[#allocation7 + $0xa8] sm:$0xff] }
  0x72   : > { %399 = vmatprep.subr.mxu0 %v366_v11  ;;  %551 = vmatpush1.msra.mxu1 %v496_v23  ;;  %v355_v32 = vld [vmem:[#allocation5 + $0x50] sm:$0xff]  ;;  %v354_v34 = vld [vmem:[#allocation5 + $0x48] sm:$0xff]  ;;  %v490_v35 = vld [vmem:[#allocation7 + $0xa0] sm:$0xff] }
  0x73   : > { %400 = vmatpush1.msra.mxu0 %v365_v12  ;;  %552 = vmatprep.subr.mxu1 %v495_v25  ;;  %v353_v36 = vld [vmem:[#allocation5 + $0x40] sm:$0xff]  ;;  %v489_v37 = vld [vmem:[#allocation7 + $0x98] sm:$0xff]  ;;  %v488_v39 = vld [vmem:[#allocation7 + $0x90] sm:$0xff] }
  0x74   : > { %401 = vmatprep.subr.mxu0 %v364_v13  ;;  %553 = vmatpush1.msra.mxu1 %v494_v27  ;;  %v352_v38 = vld [vmem:[#allocation5 + $0x38] sm:$0xff]  ;;  %v351_v40 = vld [vmem:[#allocation5 + $0x30] sm:$0xff]  ;;  %v487_v41 = vld [vmem:[#allocation7 + $0x88] sm:$0xff] }
  0x75   : > { %402 = vmatpush1.msra.mxu0 %v363_v14  ;;  %554 = vmatprep.subr.mxu1 %v493_v29  ;;  %v350_v42 = vld [vmem:[#allocation5 + $0x28] sm:$0xff]  ;;  %v486_v43 = vld [vmem:[#allocation7 + $0x80] sm:$0xff]  ;;  %v485_v45 = vld [vmem:[#allocation7 + $0x78] sm:$0xff] }
  0x76   : > { %403 = vmatprep.subr.mxu0 %v362_v17  ;;  %555 = vmatpush1.msra.mxu1 %v492_v31  ;;  %v349_v44 = vld [vmem:[#allocation5 + $0x20] sm:$0xff]  ;;  %v348_v46 = vld [vmem:[#allocation5 + $0x18] sm:$0xff]  ;;  %v484_v47 = vld [vmem:[#allocation7 + $0x70] sm:$0xff] }
  0x77   : > { %404 = vmatpush1.msra.mxu0 %v361_v20  ;;  %556 = vmatprep.subr.mxu1 %v491_v33  ;;  %v347_v48 = vld [vmem:[#allocation5 + $0x10] sm:$0xff]  ;;  %v483_v49 = vld [vmem:[#allocation7 + $0x68] sm:$0xff]  ;;  %v482_v51 = vld [vmem:[#allocation7 + $0x60] sm:$0xff] }
  0x78   : > { %405 = vmatprep.subr.mxu0 %v360_v22  ;;  %557 = vmatpush1.msra.mxu1 %v490_v35  ;;  %v346_v50 = vld [vmem:[#allocation5 + $0x8] sm:$0xff]  ;;  %v345_v52 = vld [vmem:[#allocation5] sm:$0xff]  ;;  %v481_v53 = vld [vmem:[#allocation7 + $0x58] sm:$0xff] }
  0x79   : > { %406 = vmatpush1.msra.mxu0 %v359_v24  ;;  %558 = vmatprep.subr.mxu1 %v489_v37  ;;  %v343_v54 = vld [vmem:[%s1382_s18] sm:$0xff]  ;;  %v479_v56 = vld [vmem:[#allocation7 + $0x48] sm:$0xff]  ;;  %v477_v58 = vld [vmem:[#allocation7 + $0x38] sm:$0xff] }
  0x7a   : > { %407 = vmatprep.subr.mxu0 %v358_v26  ;;  %559 = vmatpush1.msra.mxu1 %v488_v39  ;;  %v480_v55 = vld [vmem:[#allocation7 + $0x50] sm:$0xff]  ;;  %v478_v57 = vld [vmem:[#allocation7 + $0x40] sm:$0xff]  ;;  %v344_v59 = vld [vmem:[%s1382_s18 + $0x8] sm:$0xff]  ;;  %s1110_s18 = scalar_lea.vmem %s1412_s21, 256 }
  0x7b   : > { %408 = vmatpush1.msra.mxu0 %v357_v28  ;;  %560 = vmatprep.subr.mxu1 %v487_v41  ;;  %v476_v60 = vld [vmem:[#allocation7 + $0x30] sm:$0xff]  ;;  %v475_v61 = vld [vmem:[#allocation7 + $0x28] sm:$0xff]  ;;  %v474_v62 = vld [vmem:[#allocation7 + $0x20] sm:$0xff]  ;;  %p1111_p4 = scmp.ne.s32.totalorder %s1412_s21, %s1110_s18  ;;  %p1118_p0 = scmp.lt.s32.totalorder %s1116_s9, %s1110_s18 }
  0x7c   : > { %409 = vmatprep.subr.mxu0 %v356_v30  ;;  %561 = vmatpush1.msra.mxu1 %v486_v43  ;;  %v473_v63 = vld [vmem:[#allocation7 + $0x18] sm:$0xff]  ;;  %v472_v1 = vld [vmem:[#allocation7 + $0x10] sm:$0xff]  ;;  %v471_v2 = vld [vmem:[#allocation7 + $0x8] sm:$0xff] }
  0x7d   : > { %410 = vmatpush1.msra.mxu0 %v355_v32  ;;  %562 = vmatprep.subr.mxu1 %v485_v45  ;;  %v470_v3 = vld [vmem:[#allocation7] sm:$0xff]  ;;  %v533_v4 = vld [vmem:[#allocation7 + $0x1f8] sm:$0xff]  ;;  %v531_v5 = vld [vmem:[#allocation7 + $0x1e8] sm:$0xff]  ;;  %p1112_p11 = pnand %p1111_p4, %p1490_p6  ;;  %p1119_p7 = por %p1118_p0, %p1117_p3 }
  0x7e   : > { %411 = vmatprep.subr.mxu0 %v354_v34  ;;  %563 = vmatpush1.msra.mxu1 %v484_v47  ;;  %v530_v6 = vld [vmem:[#allocation7 + $0x1e0] sm:$0xff]  ;;  %v529_v7 = vld [vmem:[#allocation7 + $0x1d8] sm:$0xff]  ;;  %v528_v8 = vld [vmem:[#allocation7 + $0x1d0] sm:$0xff] }
  0x7f   : > { %412 = vmatpush1.msra.mxu0 %v353_v36  ;;  %564 = vmatprep.subr.mxu1 %v483_v49  ;;  %v527_v9 = vld [vmem:[#allocation7 + $0x1c8] sm:$0xff]  ;;  %v526_v10 = vld [vmem:[#allocation7 + $0x1c0] sm:$0xff]  ;;  %v525_v11 = vld [vmem:[#allocation7 + $0x1b8] sm:$0xff]  ;;  %p1113_p13 = pneg %p1112_p11 }
  0x80   : > { %413 = vmatprep.subr.mxu0 %v352_v38  ;;  %565 = vmatpush1.msra.mxu1 %v482_v51  ;;  %v524_v12 = vld [vmem:[#allocation7 + $0x1b0] sm:$0xff]  ;;  %v523_v13 = vld [vmem:[#allocation7 + $0x1a8] sm:$0xff]  ;;  %v522_v14 = vld [vmem:[#allocation7 + $0x1a0] sm:$0xff] }
  0x81   : > { %414 = vmatpush1.msra.mxu0 %v351_v40  ;;  %566 = vmatprep.subr.mxu1 %v481_v53  ;;  %v521_v15 = vld [vmem:[#allocation7 + $0x198] sm:$0xff]  ;;  %v520_v16 = vld [vmem:[#allocation7 + $0x190] sm:$0xff]  ;;  %v519_v17 = vld [vmem:[#allocation7 + $0x188] sm:$0xff]  ;;  %p1120_p9 = pnand %p1119_p7, %p1113_p13 }
  0x82   : > { %415 = vmatprep.subr.mxu0 %v350_v42  ;;  %567 = vmatpush1.msra.mxu1 %v480_v55  ;;  %v518_v18 = vld [vmem:[#allocation7 + $0x180] sm:$0xff]  ;;  %v517_v19 = vld [vmem:[#allocation7 + $0x178] sm:$0xff]  ;;  %v516_v20 = vld [vmem:[#allocation7 + $0x170] sm:$0xff] }
  0x83   : > { %416 = vmatpush1.msra.mxu0 %v349_v44  ;;  %568 = vmatprep.subr.mxu1 %v479_v56  ;;  %v515_v21 = vld [vmem:[#allocation7 + $0x168] sm:$0xff]  ;;  %v514_v22 = vld [vmem:[#allocation7 + $0x160] sm:$0xff]  ;;  %v513_v23 = vld [vmem:[#allocation7 + $0x158] sm:$0xff] }
  0x84   : > { %417 = vmatprep.subr.mxu0 %v348_v46  ;;  %569 = vmatpush1.msra.mxu1 %v478_v57  ;;  %v512_v24 = vld [vmem:[#allocation7 + $0x150] sm:$0xff]  ;;  %v511_v25 = vld [vmem:[#allocation7 + $0x148] sm:$0xff]  ;;  %v510_v26 = vld [vmem:[#allocation7 + $0x140] sm:$0xff] }
  0x85   : > { %418 = vmatpush1.msra.mxu0 %v347_v48  ;;  %570 = vmatprep.subr.mxu1 %v477_v58  ;;  %v509_v27 = vld [vmem:[#allocation7 + $0x138] sm:$0xff]  ;;  %v508_v28 = vld [vmem:[#allocation7 + $0x130] sm:$0xff]  ;;  %v507_v29 = vld [vmem:[#allocation7 + $0x128] sm:$0xff] }
  0x86   : > { %419 = vmatprep.subr.mxu0 %v346_v50  ;;  %571 = vmatpush1.msra.mxu1 %v476_v60  ;;  %v506_v30 = vld [vmem:[#allocation7 + $0x120] sm:$0xff]  ;;  %v505_v31 = vld [vmem:[#allocation7 + $0x118] sm:$0xff]  ;;  %v504_v32 = vld [vmem:[#allocation7 + $0x110] sm:$0xff] }
  0x87   : > { %420 = vmatpush1.msra.mxu0 %v345_v52  ;;  %572 = vmatprep.subr.mxu1 %v475_v61  ;;  %v503_v33 = vld [vmem:[#allocation7 + $0x108] sm:$0xff]  ;;  %v502_v34 = vld [vmem:[#allocation7 + $0x100] sm:$0xff]  ;;  %v658_v35 = vld [vmem:[#allocation8 + $0xf8] sm:$0xff] }
  0x88   : > { %454 = vmatmul.mubr.f32.vlgmr.msra.gmra.mxu0 %v343_v54  ;;  %573 = vmatpush1.msra.mxu1 %v474_v62  ;;  %v642_v36 = vld [vmem:[#allocation8 + $0x78] sm:$0xff]  ;;  %v657_v37 = vld [vmem:[#allocation8 + $0xf0] sm:$0xff]  ;;  %v656_v39 = vld [vmem:[#allocation8 + $0xe8] sm:$0xff] }
  0x89   : > { %459 = vmatprep.mubr.f32.mxu0 %v1192_v0  ;;  %574 = vmatprep.subr.mxu1 %v473_v63  ;;  %v532_v0 = vld [vmem:[#allocation7 + $0x1f0] sm:$0xff]  ;;  %v640_v40 = vld [vmem:[#allocation8 + $0x68] sm:$0xff]  ;;  %v655_v41 = vld [vmem:[#allocation8 + $0xe0] sm:$0xff] }
  0x8a   : > { %575 = vmatpush1.msra.mxu1 %v472_v1  ;;  %882 = vmatprep.subr.mxu0 %v658_v35  ;;  %v641_v38 = vld [vmem:[#allocation8 + $0x70] sm:$0xff]  ;;  %v639_v42 = vld [vmem:[#allocation8 + $0x60] sm:$0xff]  ;;  %v654_v43 = vld [vmem:[#allocation8 + $0xd8] sm:$0xff] }
  0x8b   : > { %576 = vmatprep.subr.mxu1 %v471_v2  ;;  %883 = vmatpush3.msra.mxu0 %v642_v36  ;;  %v638_v44 = vld [vmem:[#allocation8 + $0x58] sm:$0xff]  ;;  %v653_v45 = vld [vmem:[#allocation8 + $0xd0] sm:$0xff]  ;;  %v652_v47 = vld [vmem:[#allocation8 + $0xc8] sm:$0xff] }
  0x8c   : > { %460 = vmatmul.mubr.f32.gmra.mxu0 %v344_v59  ;;  %577 = vmatpush1.msra.mxu1 %v470_v3  ;;  %v637_v46 = vld [vmem:[#allocation8 + $0x50] sm:$0xff]  ;;  %v636_v48 = vld [vmem:[#allocation8 + $0x48] sm:$0xff]  ;;  %v651_v49 = vld [vmem:[#allocation8 + $0xc0] sm:$0xff]  ;;  %v379_v59 = vlaneseq }
  0x8d   : > { %578 = vmatprep.subr.mxu1 %v533_v4  ;;  %884 = vmatprep.subr.mxu0 %v657_v37  ;;  %v635_v50 = vld [vmem:[#allocation8 + $0x40] sm:$0xff]  ;;  %v650_v51 = vld [vmem:[#allocation8 + $0xb8] sm:$0xff]  ;;  %v649_v53 = vld [vmem:[#allocation8 + $0xb0] sm:$0xff] }
  0x8e   : > { %579 = vmatpush2.msra.mxu1 %v532_v0  ;;  %885 = vmatpush3.msra.mxu0 %v641_v38  ;;  %v634_v52 = vld [vmem:[#allocation8 + $0x38] sm:$0xff]  ;;  %v633_v54 = vld [vmem:[#allocation8 + $0x30] sm:$0xff]  ;;  %v648_v55 = vld [vmem:[#allocation8 + $0xa8] sm:$0xff]  ;;  %v380_v60 = vshrl.u32 %v379_v59, 7 }
  0x8f   : > { %580 = vmatprep.subr.mxu1 %v531_v5  ;;  %886 = vmatprep.subr.mxu0 %v656_v39  ;;  %v632_v56 = vld [vmem:[#allocation8 + $0x28] sm:$0xff]  ;;  %v647_v57 = vld [vmem:[#allocation8 + $0xa0] sm:$0xff] }
  0x90   : > { %581 = vmatpush2.msra.mxu1 %v530_v6  ;;  %887 = vmatpush3.msra.mxu0 %v640_v40  ;;  %v631_v58 = vld [vmem:[#allocation8 + $0x20] sm:$0xff]  ;;  %v381_v61 = vsub.s32 0, %v380_v60  ;;  %v385_v63 = vsub.s32 1, %v380_v60 }
  0x91   : > { %582 = vmatprep.subr.mxu1 %v529_v7  ;;  %888 = vmatprep.subr.mxu0 %v655_v41  ;;  %v377_v62 = vld [vmem:[%s1461_s2] sm:$0x3] }
  0x92   : > { %583 = vmatpush2.msra.mxu1 %v528_v8  ;;  %889 = vmatpush3.msra.mxu0 %v639_v42  ;;  %v382_v1 = vrot.slane %v377_v62, %v381_v61  ;;  %v386_v2 = vrot.slane %v377_v62, %v385_v63  ;;  %v874_v38 = vld [vmem:[%s1465_s6] ss:$0 sm:$0xff] }
  0x93   : > { %584 = vmatprep.subr.mxu1 %v527_v9  ;;  %890 = vmatprep.subr.mxu0 %v654_v43 }
  0x94   : > { %585 = vmatpush2.msra.mxu1 %v526_v10  ;;  %891 = vmatpush3.msra.mxu0 %v638_v44 }
  0x95   : > { %586 = vmatprep.subr.mxu1 %v525_v11  ;;  %892 = vmatprep.subr.mxu0 %v653_v45 }
  0x96   : > { %587 = vmatpush2.msra.mxu1 %v524_v12  ;;  %893 = vmatpush3.msra.mxu0 %v637_v46 }
  0x97   : > { %588 = vmatprep.subr.mxu1 %v523_v13  ;;  %894 = vmatprep.subr.mxu0 %v652_v47 }
  0x98   : > { %589 = vmatpush2.msra.mxu1 %v522_v14  ;;  %895 = vmatpush3.msra.mxu0 %v636_v48  ;;  %v646_v14 = vld [vmem:[#allocation8 + $0x98] sm:$0xff] }
  0x99   : > { %590 = vmatprep.subr.mxu1 %v521_v15  ;;  %896 = vmatprep.subr.mxu0 %v651_v49  ;;  %v630_v15 = vld [vmem:[#allocation8 + $0x18] sm:$0xff] }
  0x9a   : > { %591 = vmatpush2.msra.mxu1 %v520_v16  ;;  %897 = vmatpush3.msra.mxu0 %v635_v50  ;;  %v645_v16 = vld [vmem:[#allocation8 + $0x90] sm:$0xff] }
  0x9b   : > { %592 = vmatprep.subr.mxu1 %v519_v17  ;;  %898 = vmatprep.subr.mxu0 %v650_v51  ;;  %v629_v17 = vld [vmem:[#allocation8 + $0x10] sm:$0xff] }
  0x9c   : > { %593 = vmatpush2.msra.mxu1 %v518_v18  ;;  %899 = vmatpush3.msra.mxu0 %v634_v52  ;;  %v644_v18 = vld [vmem:[#allocation8 + $0x88] sm:$0xff] }
  0x9d   : > { %594 = vmatprep.subr.mxu1 %v517_v19  ;;  %900 = vmatprep.subr.mxu0 %v649_v53  ;;  %v628_v19 = vld [vmem:[#allocation8 + $0x8] sm:$0xff] }
  0x9e   : > { %595 = vmatpush2.msra.mxu1 %v516_v20  ;;  %901 = vmatpush3.msra.mxu0 %v633_v54  ;;  %v643_v20 = vld [vmem:[#allocation8 + $0x80] sm:$0xff] }
  0x9f   : > { %596 = vmatprep.subr.mxu1 %v515_v21  ;;  %902 = vmatprep.subr.mxu0 %v648_v55  ;;  %v627_v21 = vld [vmem:[#allocation8] sm:$0xff] }
  0xa0   : > { %597 = vmatpush2.msra.mxu1 %v514_v22  ;;  %903 = vmatpush3.msra.mxu0 %v632_v56  ;;  %v534_v22 = vld [vmem:[%s1463_s4] sm:$0x3] }
  0xa1   : > { %598 = vmatprep.subr.mxu1 %v513_v23  ;;  %904 = vmatprep.subr.mxu0 %v647_v57  ;;  %v539_v23 = vrot.slane %v534_v22, %v381_v61 }
  0xa2   : > { %599 = vmatpush2.msra.mxu1 %v512_v24  ;;  %905 = vmatpush3.msra.mxu0 %v631_v58  ;;  %v543_v24 = vrot.slane %v534_v22, %v385_v63 }
  0xa3   : > { %600 = vmatprep.subr.mxu1 %v511_v25  ;;  %906 = vmatprep.subr.mxu0 %v646_v14 }
  0xa4   : > { %601 = vmatpush2.msra.mxu1 %v510_v26  ;;  %907 = vmatpush3.msra.mxu0 %v630_v15 }
  0xa5   : > { %602 = vmatprep.subr.mxu1 %v509_v27  ;;  %908 = vmatprep.subr.mxu0 %v645_v16 }
  0xa6   : > { %603 = vmatpush2.msra.mxu1 %v508_v28  ;;  %909 = vmatpush3.msra.mxu0 %v629_v17 }
  0xa7   : > { %604 = vmatprep.subr.mxu1 %v507_v29  ;;  %910 = vmatprep.subr.mxu0 %v644_v18 }
  0xa8   : > { %605 = vmatpush2.msra.mxu1 %v506_v30  ;;  %911 = vmatpush3.msra.mxu0 %v628_v19 }
  0xa9   : > { %606 = vmatprep.subr.mxu1 %v505_v31  ;;  %912 = vmatprep.subr.mxu0 %v643_v20 }
  0xaa   : > { %607 = vmatpush2.msra.mxu1 %v504_v32  ;;  %913 = vmatpush3.msra.mxu0 %v627_v21 }
  0xab   : > { %608 = vmatprep.subr.mxu1 %v503_v33 }
  0xac   : > { %609 = vmatpush2.msra.mxu1 %v502_v34 }
 0x148   : > { %v455_v3 = vpop.f32.mrf.mxu0 }
 0x149   : > { %v456_v4 = vadd.f32 %v455_v3, %v382_v1 }
 0x14a   : > { %v457_v0 = vpop.f32.mrf.mxu0 }
 0x14b   : > { %v458_v5 = vadd.f32 %v457_v0, %v386_v2  ;;  %v466_v8 = vmax.f32 %v456_v4, 0.0 }
 0x14c   : > { %v461_v6 = vpop.f32.mrf.mxu0 }
 0x14d   : > { %v467_v7 = vmax.f32 %v458_v5, 0.0  ;;  %v462_v9 = vadd.f32 %v461_v6, %v382_v1 }
 0x14e   : > { %v463_v10 = vpop.f32.mrf.mxu0 }
 0x14f   : > { %v464_v11 = vadd.f32 %v463_v10, %v386_v2  ;;  %610 = vmatprep.mubr.f32.mxu1 %v467_v7  ;;  %v468_v13 = vmax.f32 %v462_v9, 0.0 }
 0x150   : > { %611 = vmatmul.mubr.f32.vlgmr.msra.gmra.mxu1 %v466_v8 }
 0x151   : > { %v469_v12 = vmax.f32 %v464_v11, 0.0 }
 0x153   : > { %616 = vmatprep.mubr.f32.mxu1 %v469_v12 }
 0x154   : > { %617 = vmatmul.mubr.f32.gmra.mxu1 %v468_v13 }
 0x210   : > { %v612_v25 = vpop.f32.mrf.mxu1 }
 0x211   : > { %v613_v26 = vadd.f32 %v612_v25, %v539_v23 }
 0x212   : > { %v614_v27 = vpop.f32.mrf.mxu1 }
 0x213   : > { %v615_v28 = vadd.f32 %v614_v27, %v543_v24  ;;  %v623_v31 = vmax.f32 %v613_v26, 0.0 }
 0x214   : > { %v618_v29 = vpop.f32.mrf.mxu1 }
 0x215   : > { %v624_v30 = vmax.f32 %v615_v28, 0.0  ;;  %v619_v32 = vadd.f32 %v618_v29, %v539_v23 }
 0x216   : > { %v620_v33 = vpop.f32.mrf.mxu1 }
 0x217   : > { %v621_v34 = vadd.f32 %v620_v33, %v543_v24  ;;  %730 = vmatprep.mubr.f32.mxu0 %v624_v30  ;;  %v625_v36 = vmax.f32 %v619_v32, 0.0 }
 0x218   : > { %731 = vmatmul.mubr.f32.vlgmr.msra.gmra.mxu0 %v623_v31 }
 0x219   : > { %v626_v35 = vmax.f32 %v621_v34, 0.0 }
 0x21b   : > { %735 = vmatprep.mubr.f32.mxu0 %v626_v35 }
 0x21c   : > { %736 = vmatmul.mubr.f32.gmra.mxu0 %v625_v36 }
 0x2d8   : > { %v914_v37 = vpop.f32.mrf.mxu0 }
 0x2da   : > { %v915_v39 = vpop.f32.mrf.mxu0 }
 0x2db   : > { %v916_v40 = vadd.f32 %v915_v39, %v914_v37 }
 0x2dc   : > { %v917_v41 = vpop.f32.mrf.mxu0 }
 0x2dd   : > { %v733_v42 = vadd.f32 %v916_v40, %v874_v38 }
 0x2de   : > { %v918_v43 = vpop.f32.mrf.mxu0 }
 0x2df   : > { %741 = vst [vmem:[%s340_s14] sm:$0xff] %v733_v42  ;;  %v919_v44 = vadd.f32 %v918_v43, %v917_v41 }
 0x2e1   : > { %v738_v45 = vadd.f32 %v919_v44, %v874_v38 }
 0x2e3   : > { %742 = vst [vmem:[%s340_s14 + $0x8] sm:$0xff] %v738_v45 }
 0x2e4   : > { %1123 = shalt.err (!%p1120_p9)
}
 0x2e5   : > { %s1124_s10 = scalar_lea.hbm %s1417_s16, 256  ;;  %s1128_s29 = scalar_lea.hbm %s1466_s7, 1024 }
 0x2e6   : > { %p1125_p1 = scmp.ne.s32.totalorder %s1417_s16, %s1124_s10  ;;  %p1129_p10 = scmp.lt.s32.totalorder %s1417_s16, %s1466_s7 }
 0x2e7   : > { %p1130_p12 = scmp.lt.s32.totalorder %s1128_s29, %s1124_s10 }
 0x2e8   : > { %p1126_p8 = pnand %p1125_p1, %p1490_p6 }
 0x2e9   : > { %p1131_p2 = por %p1130_p12, %p1129_p10 }
 0x2ea   : > { %p1127_p5 = pneg %p1126_p8 }
 0x2ec   : > { %p1132_p4 = pnand %p1131_p2, %p1127_p5 }
 0x2ee   : > { %1135 = shalt.err (!%p1132_p4)
}
 0x2ef   : > { %s1194_s11 = smov 128   ;;  %s1195_s23 = smov 8  }
 0x2f0   : > { %934 = dma.vmem_to_hbm [thread:$0]  (%p1490_p6), %s1412_s21, 256, %s1417_s16, %s744_s1, %s1194_s11, %s1194_s11, %s1195_s23  }
 0x2f1 PF: > { %p961_p11 = scmp.ge.s32.totalorder %s1182_s27, 2  ;;  %s772_s18 = sand.u32 1, %s1170_s24  }
 0x2f2   : > { %p1491_p13 = scmp.ne.s32.totalorder %s1475_s8, 0  ;;  %s773_s28 = scalar_lea.sflag [#allocation4], %s772_s18 }
 0x2f4   : > { %p951_p3 = pnand %p961_p11, %p1491_p13 }
 0x2f6   : > { %p952_p0 = pneg %p951_p3 }
 0x2f8   : > { %1165 = dma.done.wait (%p952_p0), %s773_s28, 256  }
 0x2f9   : > { %1167 = vsyncadd (%p952_p0), %s773_s28, 4294967040  ;;  %p22_p7 = scmp.ge.s32.totalorder %s1318_s17, 6   ;;  %s1492_s24 = smov %s1174_s25 }
 0x2fa   : > { %s1493_s25 = smov %s1178_s26  ;;  %s1494_s26 = smov %s1328_s20 }
 0x2fb   : > { %s1495_s27 = smov %s1318_s17  ;;  %24 = sbr.rel (!%p22_p7) target bundleno = 9 (0x9), region = 105 }
 0x300   :  { %778 = vsyncpa [#allocation3], 1 }
 0x301   :  { %780 = vsyncpa [#allocation3 + $0x1], 1 }
 0x302   :  { %781 = vsyncpa [#allocation6], 1 }
 0x303   :  { %782 = vsyncpa [#allocation9], 1 }
 0x304   :  { %783 = vsyncpa [#allocation4], 1 }
 0x305   :  { %785 = vsyncpa [#allocation4 + $0x1], 1 }

</bundles_post_ra>
